<compile_context>
chip_gen: v5e
topology: v5e:2x2
jax: 0.10.0
libtpu: 0.0.40
codegen_flags: <defaults>
</compile_context>

<pallas_src>
import math

import jax
import jax.numpy as jnp
from jax import lax
from jax.experimental import pallas as pl
from jax.experimental.pallas import tpu as pltpu


def _derm_mf_kernel(u_ref,     # VMEM (tb, E)    f32  user embeddings (this tile)
                    i_ref,     # VMEM (tb, E)    f32  item embeddings (this tile)
                    wmid_ref,  # VMEM (4, E)     f32  [rating; reason; video; interest] mid halves
                    wtag_ref,  # VMEM (4, E)     f32  [0; reason; video; interest] tag halves
                    b4_ref,    # VMEM (4, 1)     f32  biases
                    tag_ref,   # VMEM (tb*C, E)  f32  gathered tag rows, candidate-major in tile
                    out_ref):  # VMEM (4, tb*C)  f32  lane-dense output
    tb = u_ref.shape[0]
    tbc = tag_ref.shape[0]
    C = tbc // tb

    # mid-state + fused 4-row head (rating head + mid halves of the 3 tag heads)
    mid = u_ref[...] * i_ref[...]                                      # (tb, E)  VPU
    mid_part_t = lax.dot_general(wmid_ref[...], mid,
                                 (((1,), (1,)), ((), ())),
                                 preferred_element_type=jnp.float32)   # (4, tb)
    mid_part_t = mid_part_t + b4_ref[...]                              # fold biases

    # Candidate-major column layout (col = c*tb + b): the per-batch broadcast is
    # a pure lane concatenation -- no rep matrix, no extra MXU pass, no transpose.
    mid_rep_t = jnp.concatenate([mid_part_t] * C, axis=1)              # (4, tb*C)

    # Tag halves of all three heads: one flattened contraction over the tile.
    tag_part_t = lax.dot_general(wtag_ref[...], tag_ref[...],
                                 (((1,), (1,)), ((), ())),
                                 preferred_element_type=jnp.float32)   # (4, tb*C)

    logits_t = mid_rep_t + tag_part_t
    head_ids = lax.broadcasted_iota(jnp.int32, logits_t.shape, 0)
    # Head 0 = raw rating, heads 1..3 = sigmoid scores.  (The sigmoid on row 0 is
    # intentionally computed and discarded -- EUP slack, keeps one full-width store.)
    out_ref[...] = jnp.where(head_ids == 0, logits_t, jax.nn.sigmoid(logits_t))


def derm_mf_forward(params, user, item, candi_tags, *, batch_tile=None):
    """Fused DERM_MF inference.

    Returns (rating (B,), reason (B,C), video (B,C), interest (B,C)).
    """
    E = params["user_emb"].shape[1]
    B, C = candi_tags.shape

    # Tile quantum: tb % 8 == 0 and (tb*C) % 128 == 0 -> every tile presents a
    # lane-dense (multiple-of-128) output slab and satisfies the (8,128) rule.
    tb0 = math.lcm(8, 128 // math.gcd(C, 128))
    if batch_tile is None:
        tb = pl.cdiv(B, tb0) * tb0          # single largest tile (v5e/v6e default)
        num_tiles = 1
    else:
        tb = pl.cdiv(int(batch_tile), tb0) * tb0
        num_tiles = max(1, pl.cdiv(B, tb))  # >=2 tiles to use both v7x TensorCores
    Bp = num_tiles * tb

    u_emb = params["user_emb"][user].astype(jnp.float32)               # (B, E)
    i_emb = params["item_emb"][item].astype(jnp.float32)               # (B, E)
    if Bp != B:
        pad = Bp - B
        u_emb = jnp.pad(u_emb, ((0, pad), (0, 0)))
        i_emb = jnp.pad(i_emb, ((0, pad), (0, 0)))
        candi_tags = jnp.pad(candi_tags, ((0, pad), (0, 0)))            # id 0 is a valid row

    # Bulk tag gather done by XLA (bandwidth-efficient streaming) instead of
    # per-row in-kernel DMAs; rows are laid out candidate-major *within each
    # batch tile* (flat row = tile*tb*C + c*tb + b) to match the kernel layout.
    ids = candi_tags.astype(jnp.int32).reshape(num_tiles, tb, C)
    ids = jnp.transpose(ids, (0, 2, 1)).reshape(Bp * C)
    tag_flat = params["tag_emb"].astype(jnp.float32)[ids]              # (Bp*C, E)
    # TODO(synk): for production-scale runs on v6e/v7x, cast tag_flat/u_emb/i_emb
    # and the (4,E) weight slabs to bfloat16 (keep the f32 accumulate path);
    # kept f32 here to match the reference exactly.

    # Fuse the rating head with the mid-state halves of the three 2E->1 heads,
    # and pack the tag halves with a zero rating row:
    #   Linear(cat(mid, tag)) == mid @ Wm.T + tag @ Wt.T + b
    wmid_t = jnp.stack([params["w_rating"][0],
                        params["w_reason"][0, :E],
                        params["w_video"][0, :E],
                        params["w_interest"][0, :E]], axis=0)           # (4, E)
    wtag_t = jnp.stack([jnp.zeros((E,), jnp.float32),
                        params["w_reason"][0, E:],
                        params["w_video"][0, E:],
                        params["w_interest"][0, E:]], axis=0)           # (4, E)
    b4_t = jnp.stack([params["b_rating"][0], params["b_reason"][0],
                      params["b_video"][0], params["b_interest"][0]]).reshape(4, 1)

    # Memory-bound kernel: accurate bytes_accessed hint for XLA scheduling, and an
    # explicit scoped-VMEM limit (v5e default is 16 MiB) capped below v7x's 64 MiB.
    tile_bytes = 4 * (tb * C * E + 2 * tb * E + 4 * tb * C + 2 * 4 * E + 4)
    vmem_limit = int(min(48 << 20, max(16 << 20, 4 * tile_bytes)))
    cost = pl.CostEstimate(
        flops=2 * 4 * E * (Bp * C + Bp),
        transcendentals=4 * Bp * C,
        bytes_accessed=4 * (Bp * C * E + 2 * Bp * E + 4 * Bp * C + 8 * E + 4))

    out = pl.pallas_call(
        _derm_mf_kernel,
        grid=(num_tiles,),
        in_specs=[
            pl.BlockSpec((tb, E), lambda i: (i, 0)),                    # u_emb
            pl.BlockSpec((tb, E), lambda i: (i, 0)),                    # i_emb
            pl.BlockSpec((4, E), lambda i: (0, 0)),                     # wmid_t
            pl.BlockSpec((4, E), lambda i: (0, 0)),                     # wtag_t
            pl.BlockSpec((4, 1), lambda i: (0, 0)),                     # b4_t
            pl.BlockSpec((tb * C, E), lambda i: (i, 0)),                # tag_flat
        ],
        out_specs=pl.BlockSpec((4, tb * C), lambda i: (0, i)),
        out_shape=jax.ShapeDtypeStruct((4, Bp * C), jnp.float32),
        compiler_params=pltpu.CompilerParams(
            dimension_semantics=("parallel",),
            vmem_limit_bytes=vmem_limit),
        cost_estimate=cost,
    )(u_emb, i_emb, wmid_t, wtag_t, b4_t, tag_flat)

    # Undo the candidate-major-within-tile layout and drop batch padding.
    out = out.reshape(4, num_tiles, C, tb)
    out = jnp.transpose(out, (0, 1, 3, 2)).reshape(4, Bp, C)[:, :B, :]
    rating = out[0, :, 0]                     # predict_rating(...).squeeze(-1)
    return rating, out[1], out[2], out[3]


def ref_forward(params, user, item, candi_tags):
    """Pure-JAX reference matching the PyTorch module semantics."""
    u = params["user_emb"][user]
    i = params["item_emb"][item]
    mid = u * i
    rating = (mid @ params["w_rating"].T + params["b_rating"])[:, 0]
    tag = params["tag_emb"][candi_tags]                 # (B, C, E)
    inp = jnp.concatenate(
        [jnp.broadcast_to(mid[:, None, :], tag.shape), tag], axis=-1)
    reason = jax.nn.sigmoid(inp @ params["w_reason"].T + params["b_reason"])[..., 0]
    video = jax.nn.sigmoid(inp @ params["w_video"].T + params["b_video"])[..., 0]
    interest = jax.nn.sigmoid(inp @ params["w_interest"].T + params["b_interest"])[..., 0]
    return rating, reason, video, interest


def init_params(key, user_num, item_num, tag_num, emb_size):
    ks = jax.random.split(key, 7)
    std = 0.01
    return {
        "user_emb": std * jax.random.normal(ks[0], (user_num, emb_size), jnp.float32),
        "item_emb": std * jax.random.normal(ks[1], (item_num, emb_size), jnp.float32),
        "tag_emb": std * jax.random.normal(ks[2], (tag_num, emb_size), jnp.float32),
        "w_rating": std * jax.random.normal(ks[3], (1, emb_size), jnp.float32),
        "b_rating": jnp.zeros((1,), jnp.float32),
        "w_reason": std * jax.random.normal(ks[4], (1, 2 * emb_size), jnp.float32),
        "b_reason": jnp.zeros((1,), jnp.float32),
        "w_video": std * jax.random.normal(ks[5], (1, 2 * emb_size), jnp.float32),
        "b_video": jnp.zeros((1,), jnp.float32),
        "w_interest": std * jax.random.normal(ks[6], (1, 2 * emb_size), jnp.float32),
        "b_interest": jnp.zeros((1,), jnp.float32),
    }


if __name__ == "__main__":
    # Small synthetic config consistent with the module.
    USER_NUM, ITEM_NUM, TAG_NUM = 32, 48, 64
    EMB, CAND, BATCH = 32, 8, 4

    key = jax.random.PRNGKey(0)
    kp, ku, ki, kt = jax.random.split(key, 4)
    params = init_params(kp, USER_NUM, ITEM_NUM, TAG_NUM, EMB)

    user = jax.random.randint(ku, (BATCH,), 0, USER_NUM, jnp.int32)
    item = jax.random.randint(ki, (BATCH,), 0, ITEM_NUM, jnp.int32)
    candi_tags = jax.random.randint(kt, (BATCH, CAND), 0, TAG_NUM, jnp.int32)

    out = derm_mf_forward(params, user, item, candi_tags)
    out = jax.block_until_ready(out)

    ref = ref_forward(params, user, item, candi_tags)
    for o, r in zip(out, ref):
        assert o.shape == r.shape, (o.shape, r.shape)
        assert jnp.allclose(o, r, atol=1e-5, rtol=1e-5), float(jnp.abs(o - r).max())

    # TODO(synk): loss functions (MSE/BCE), calculate_l2_loss and forward()->None are
    # trivial reductions / no-ops left in plain JAX.
    print("KERNEL_OK")
</pallas_src>

<mosaic_0001>
module attributes {stable_mosaic.version = 11 : i64} {
  func.func @_derm_mf_kernel(%arg0: i32, %arg1: memref<16x32xf32, #tpu.memory_space<vmem>>, %arg2: memref<16x32xf32, #tpu.memory_space<vmem>>, %arg3: memref<4x32xf32, #tpu.memory_space<vmem>>, %arg4: memref<4x32xf32, #tpu.memory_space<vmem>>, %arg5: memref<4x1xf32, #tpu.memory_space<vmem>>, %arg6: memref<128x32xf32, #tpu.memory_space<vmem>>, %arg7: memref<4x128xf32, #tpu.memory_space<vmem>>) attributes {dimension_semantics = [#tpu.dimension_semantics<parallel>], iteration_bounds = array<i64: 1>, scalar_prefetch = 0 : i64, scratch_operands = 0 : i64, tpu.core_type = #tpu.core_type<tc>, window_params = [{transform_indices = @transform_0, window_bounds = array<i64: 16, 32>}, {transform_indices = @transform_1, window_bounds = array<i64: 16, 32>}, {pipeline_mode = #tpu.pipeline_mode<synchronous>, transform_indices = @transform_2, window_bounds = array<i64: 4, 32>}, {pipeline_mode = #tpu.pipeline_mode<synchronous>, transform_indices = @transform_3, window_bounds = array<i64: 4, 32>}, {pipeline_mode = #tpu.pipeline_mode<synchronous>, transform_indices = @transform_4, window_bounds = array<i64: 4, 1>}, {transform_indices = @transform_5, window_bounds = array<i64: 128, 32>}, {transform_indices = @transform_6, window_bounds = array<i64: 4, 128>}]} {
    %c0 = arith.constant 0 : index
    %c0_0 = arith.constant 0 : index
    %0 = vector.load %arg1[%c0, %c0_0] : memref<16x32xf32, #tpu.memory_space<vmem>>, vector<16x32xf32>
    %c0_1 = arith.constant 0 : index
    %c0_2 = arith.constant 0 : index
    %1 = vector.load %arg2[%c0_1, %c0_2] : memref<16x32xf32, #tpu.memory_space<vmem>>, vector<16x32xf32>
    %2 = arith.mulf %0, %1 : vector<16x32xf32>
    %c0_3 = arith.constant 0 : index
    %c0_4 = arith.constant 0 : index
    %3 = vector.load %arg3[%c0_3, %c0_4] : memref<4x32xf32, #tpu.memory_space<vmem>>, vector<4x32xf32>
    %cst = arith.constant dense<0.000000e+00> : vector<4x16xf32>
    %4 = tpu.matmul %3, %2, %cst {dimension_numbers = #tpu.dot_dimension_numbers<[1], [1], [0], [0], [0, 0, 1, 0], [], []>} : vector<4x32xf32>, vector<16x32xf32>, vector<4x16xf32> -> vector<4x16xf32>
    %c0_5 = arith.constant 0 : index
    %c0_6 = arith.constant 0 : index
    %5 = vector.load %arg5[%c0_5, %c0_6] : memref<4x1xf32, #tpu.memory_space<vmem>>, vector<4x1xf32>
    %6 = vector.broadcast %5 : vector<4x1xf32> to vector<4x16xf32>
    %7 = arith.addf %4, %6 : vector<4x16xf32>
    %8 = tpu.concatenate %7, %7, %7, %7, %7, %7, %7, %7 in 1 : vector<4x16xf32>, vector<4x16xf32>, vector<4x16xf32>, vector<4x16xf32>, vector<4x16xf32>, vector<4x16xf32>, vector<4x16xf32>, vector<4x16xf32> -> vector<4x128xf32>
    %c0_7 = arith.constant 0 : index
    %c0_8 = arith.constant 0 : index
    %9 = vector.load %arg4[%c0_7, %c0_8] : memref<4x32xf32, #tpu.memory_space<vmem>>, vector<4x32xf32>
    %c0_9 = arith.constant 0 : index
    %c0_10 = arith.constant 0 : index
    %10 = vector.load %arg6[%c0_9, %c0_10] : memref<128x32xf32, #tpu.memory_space<vmem>>, vector<128x32xf32>
    %cst_11 = arith.constant dense<0.000000e+00> : vector<4x128xf32>
    %11 = tpu.matmul %9, %10, %cst_11 {dimension_numbers = #tpu.dot_dimension_numbers<[1], [1], [0], [0], [0, 0, 1, 0], [], []>} : vector<4x32xf32>, vector<128x32xf32>, vector<4x128xf32> -> vector<4x128xf32>
    %12 = arith.addf %8, %11 : vector<4x128xf32>
    %13 = tpu.iota {dimensions = array<i32: 0>} : vector<4x128xi32>
    %c0_i32 = arith.constant 0 : i32
    %14 = vector.broadcast %c0_i32 : i32 to vector<4x128xi32>
    %15 = arith.cmpi eq, %13, %14 : vector<4x128xi32>
    %16 = arith.negf %12 : vector<4x128xf32>
    %17 = math.exp %16 : vector<4x128xf32>
    %cst_12 = arith.constant 1.000000e+00 : f32
    %18 = vector.broadcast %cst_12 : f32 to vector<4x128xf32>
    %19 = arith.addf %18, %17 : vector<4x128xf32>
    %20 = arith.divf %18, %19 : vector<4x128xf32>
    %21 = arith.select %15, %12, %20 : vector<4x128xi1>, vector<4x128xf32>
    %c0_13 = arith.constant 0 : index
    %c0_14 = arith.constant 0 : index
    %22 = vector.load %arg7[%c0_13, %c0_14] : memref<4x128xf32, #tpu.memory_space<vmem>>, vector<4x128xf32>
    tpu.vector_store %arg7[%c0_13, %c0_14], %21 {strides = array<i32>} : memref<4x128xf32, #tpu.memory_space<vmem>>, vector<4x128xf32>,
    return
  }
  func.func @transform_0(%arg0: i32) -> (i32, i32) {
    %c0_i32 = arith.constant 0 : i32
    %c0_i32_0 = arith.constant 0 : i32
    return %arg0, %c0_i32 : i32, i32
  }
  func.func @transform_1(%arg0: i32) -> (i32, i32) {
    %c0_i32 = arith.constant 0 : i32
    %c0_i32_0 = arith.constant 0 : i32
    return %arg0, %c0_i32 : i32, i32
  }
  func.func @transform_2(%arg0: i32) -> (i32, i32) {
    %c0_i32 = arith.constant 0 : i32
    %c0_i32_0 = arith.constant 0 : i32
    %c0_i32_1 = arith.constant 0 : i32
    return %c0_i32, %c0_i32_0 : i32, i32
  }
  func.func @transform_3(%arg0: i32) -> (i32, i32) {
    %c0_i32 = arith.constant 0 : i32
    %c0_i32_0 = arith.constant 0 : i32
    %c0_i32_1 = arith.constant 0 : i32
    return %c0_i32, %c0_i32_0 : i32, i32
  }
  func.func @transform_4(%arg0: i32) -> (i32, i32) {
    %c0_i32 = arith.constant 0 : i32
    %c0_i32_0 = arith.constant 0 : i32
    %c0_i32_1 = arith.constant 0 : i32
    return %c0_i32, %c0_i32_0 : i32, i32
  }
  func.func @transform_5(%arg0: i32) -> (i32, i32) {
    %c0_i32 = arith.constant 0 : i32
    %c0_i32_0 = arith.constant 0 : i32
    return %arg0, %c0_i32 : i32, i32
  }
  func.func @transform_6(%arg0: i32) -> (i32, i32) {
    %c0_i32 = arith.constant 0 : i32
    %c0_i32_0 = arith.constant 0 : i32
    return %c0_i32, %arg0 : i32, i32
  }
}

</mosaic_0001>

<bundles_post_ra>
// kernel: tpu_custom_call.1
= control target key start
LH: loop header
LB: loop body
LE: loop exit
PB: predicated region body
PF: predicated region fallthrough
CT: control target
= control target key end

     0   :  { %vm37_vm0 = vcmask 261120   ;;  %v292_v5 = vmov 0   ;;  %s429_s0 = inlined_call_operand.vmem [shape: f32[16,32], index: 0, kind: input, shape index: {}]   ;;  %s430_s1 = inlined_call_operand.vmem [shape: f32[16,32], index: 1, kind: input, shape index: {}]   ;;  %s431_s2 = inlined_call_operand.vmem [shape: f32[4,32], index: 2, kind: input, shape index: {}]   ;;  %s432_s3 = inlined_call_operand.vmem [shape: f32[4,32], index: 3, kind: input, shape index: {}]   ;;  %s433_s4 = inlined_call_operand.vmem [shape: f32[4,1], index: 4, kind: input, shape index: {}]   ;;  %s434_s5 = inlined_call_operand.vmem [shape: f32[128,32], index: 5, kind: input, shape index: {}]   ;;  %s435_s6 = inlined_call_operand.hbm [shape: f32[4,128], index: 6, kind: output, shape index: {}]  }
   0x1   :  { %v25_v0 = vld [vmem:[%s429_s0 + $0x8] sm:$0xff]  ;;  %v24_v2 = vld [vmem:[%s429_s0] sm:$0xff]  ;;  %261 = vset.pattern.permute.xlu0 %v292_v5  ;;  %v118_v7 = vld [vmem:[%s434_s5 + $0x78] sm:$0xff] }
   0x2   :  { %v27_v1 = vld [vmem:[%s430_s1 + $0x8] sm:$0xff]  ;;  %v26_v4 = vld [vmem:[%s430_s1] sm:$0xff]  ;;  %234 = vmatpush.xpose.msk.msra.mxu1 %vm37_vm0, %v118_v7  ;;  %v117_v9 = vld [vmem:[%s434_s5 + $0x70] sm:$0xff] }
   0x3   :  { %v29_v3 = vmul.f32 %v27_v1, %v25_v0  ;;  %v31_v6 = vld [vmem:[%s433_s4] sm:$0xf]  ;;  %v28_v8 = vmul.f32 %v26_v4, %v24_v2 }
   0x4   :  { %34 = vperm.xlu0 %261, %v31_v6  }
   0x5   :  { %231 = vmatpush.xpose.msk.msra.mxu0 %vm37_vm0, %v29_v3 }
   0x6   :  { %11 = vsyncpa [#allocation3], 0  ;;  %v30_v10 = vld [vmem:[%s431_s2] sm:$0xf]  ;;  %235 = vmatpush.xpose.msk.msra.mxu1 %vm37_vm0, %v117_v9  ;;  %v116_v11 = vld [vmem:[%s434_s5 + $0x68] sm:$0xff]  ;;  %s293_s12 = smov 64   ;;  %v191_v49 = vlaneseq }
   0x7   :  { %v115_v12 = vld [vmem:[%s434_s5 + $0x60] sm:$0xff]  ;;  %v114_v13 = vld [vmem:[%s434_s5 + $0x58] sm:$0xff]  ;;  %v113_v14 = vld [vmem:[%s434_s5 + $0x50] sm:$0xff]  ;;  %s294_s13 = smov 32   ;;  %s295_s14 = smov 16   ;;  %vm89_vm1 = vcmask 130048  }
   0x8   :  { %v112_v15 = vld [vmem:[%s434_s5 + $0x48] sm:$0xff]  ;;  %v111_v16 = vld [vmem:[%s434_s5 + $0x40] sm:$0xff]  ;;  %v110_v17 = vld [vmem:[%s434_s5 + $0x38] sm:$0xff]  ;;  %s296_s15 = smov 80   ;;  %s298_s2 = smov 96   ;;  %vm92_vm2 = vcmask 392192  }
   0x9   :  { %232 = vmatpush.xpose.msk.msra.mxu0 %vm37_vm0, %v28_v8  ;;  %v109_v18 = vld [vmem:[%s434_s5 + $0x30] sm:$0xff]  ;;  %v108_v19 = vld [vmem:[%s434_s5 + $0x28] sm:$0xff]  ;;  %v107_v20 = vld [vmem:[%s434_s5 + $0x20] sm:$0xff]  ;;  %s299_s16 = smov 112   ;;  %vm94_vm3 = vcmask 523264   ;;  %vm96_vm4 = vcmask 654336  }
   0xa   :  { %236 = vmatpush.xpose.msk.msra.mxu1 %vm37_vm0, %v116_v11  ;;  %v106_v21 = vld [vmem:[%s434_s5 + $0x18] sm:$0xff]  ;;  %v105_v22 = vld [vmem:[%s434_s5 + $0x10] sm:$0xff]  ;;  %v104_v23 = vld [vmem:[%s434_s5 + $0x8] sm:$0xff]  ;;  %vm98_vm5 = vcmask 785408   ;;  %vm100_vm6 = vcmask 916480   ;;  %v192_v52 = vshrl.u32 %v191_v49, 7 }
   0xb   :  { %v103_v24 = vld [vmem:[%s434_s5] sm:$0xff]  ;;  %s297_s5 = smov 48   ;;  %s222_s20 = sshll.u32 %s435_s6, 4  ;;  %s223_s20 = int_to_ptr.hbm [resolvable:$true] %s222_s20 }
   0xc   :  { %233 = vmatmul.msk.f32.vlgmr.msra.gmra.mxu0 %vm37_vm0, %v30_v10  ;;  %v102_v25 = vld [vmem:[%s432_s3] sm:$0xf]  ;;  %s300_s3 = smov [#allocation2]   ;;  %vm193_vm9 = vcmp.eq.s32.totalorder %v192_v52, 0 }
   0xd   :  { %s220_s17 = sshll.u32 %s300_s3, 4  ;;  %s221_s17 = int_to_ptr.vmem [resolvable:$true] %s220_s17 }
   0xe   :  { %237 = vmatpush.xpose.msk.msra.mxu1 %vm37_vm0, %v115_v12 }
  0x12   :  { %238 = vmatpush.xpose.msk.msra.mxu1 %vm37_vm0, %v114_v13 }
  0x16   :  { %239 = vmatpush.xpose.msk.msra.mxu1 %vm37_vm0, %v113_v14 }
  0x1a   :  { %240 = vmatpush.xpose.msk.msra.mxu1 %vm37_vm0, %v112_v15 }
  0x1e   :  { %241 = vmatpush.xpose.msk.msra.mxu1 %vm37_vm0, %v111_v16 }
  0x22   :  { %242 = vmatpush.xpose.msk.msra.mxu1 %vm37_vm0, %v110_v17 }
  0x26   :  { %243 = vmatpush.xpose.msk.msra.mxu1 %vm37_vm0, %v109_v18 }
  0x2a   :  { %244 = vmatpush.xpose.msk.msra.mxu1 %vm37_vm0, %v108_v19 }
  0x2e   :  { %245 = vmatpush.xpose.msk.msra.mxu1 %vm37_vm0, %v107_v20 }
  0x32   :  { %246 = vmatpush.xpose.msk.msra.mxu1 %vm37_vm0, %v106_v21 }
  0x36   :  { %247 = vmatpush.xpose.msk.msra.mxu1 %vm37_vm0, %v105_v22 }
  0x3a   :  { %248 = vmatpush.xpose.msk.msra.mxu1 %vm37_vm0, %v104_v23 }
  0x3e   :  { %249 = vmatpush.xpose.msk.msra.mxu1 %vm37_vm0, %v103_v24 }
  0x41   :  { %250 = vmatmul.msk.f32.vlgmr.msra.gmra.mxu1 %vm37_vm0, %v102_v25 }
  0x76   :  { %v35_v26 = vpop.permute.xlu0 %34 }
  0x89   :  { %v64_v27 = vpop.f32.mrf.mxu0 }
  0x8a   :  { %v65_v28 = vadd.f32 %v64_v27, %v35_v26 }
  0x8c   :  { %77 = vrot.lane.b32.xlu2 %v65_v28, %s293_s12  ;;  %71 = vrot.lane.b32.xlu1 %v65_v28, %s294_s13 }
  0x8d   :  { %68 = vrot.lane.b32.xlu0 %v65_v28, %s295_s14 }
  0x94   :  { %80 = vrot.lane.b32.xlu2 %v65_v28, %s296_s15  ;;  %74 = vrot.lane.b32.xlu1 %v65_v28, %s297_s5 }
  0x95   :  { %83 = vrot.lane.b32.xlu0 %v65_v28, %s298_s2 }
  0x9c   :  { %86 = vrot.lane.b32.xlu1 %v65_v28, %s299_s16 }
  0xbe   :  { %v187_v40 = vpop.f32.mrf.mxu1 }
  0xe6   :  { %v78_v30 = vpop.permute.xlu2 %77 }
  0xee   :  { %v81_v37 = vpop.permute.xlu2 %80 }
  0xfe   :  { %v72_v29 = vpop.permute.xlu1 %71 }
  0xff   :  { %v69_v31 = vpop.permute.xlu0 %68 }
 0x100   :  { %v90_v32 = vsel %vm89_vm1, %v65_v28, %v69_v31 }
 0x101   :  { %v91_v34 = vsel %vm37_vm0, %v90_v32, %v72_v29 }
 0x106   :  { %v75_v33 = vpop.permute.xlu1 %74 }
 0x107   :  { %v93_v35 = vsel %vm92_vm2, %v91_v34, %v75_v33  ;;  %v84_v39 = vpop.permute.xlu0 %83 }
 0x108   :  { %v95_v36 = vsel %vm94_vm3, %v93_v35, %v78_v30 }
 0x109   :  { %v97_v38 = vsel %vm96_vm4, %v95_v36, %v81_v37 }
 0x10a   :  { %v99_v41 = vsel %vm98_vm5, %v97_v38, %v84_v39 }
 0x10e   :  { %v87_v42 = vpop.permute.xlu1 %86 }
 0x10f   :  { %v101_v43 = vsel %vm100_vm6, %v99_v41, %v87_v42 }
 0x110   :  { %v190_v44 = vadd.f32 %v187_v40, %v101_v43 }
 0x112   :  { %v251_v45 = vmul.f32 -1.442695, %v190_v44 }
 0x114   :  { %262 = vpow2.f32 %v251_v45 }
 0x11a   :  { %v263_v46 = vpop.eup %262 }
 0x11b   :  { %v197_v47 = vadd.f32 1.0, %v263_v46 }
 0x11d   :  { %264 = vrcp.f32 %v197_v47  ;;  %v209_v53 = vand.u32 2147483648, %v197_v47  ;;  %v207_v55 = vand.u32 2147483647, %v197_v47  ;;  %vm203_vm8 = vweird.f32 %v197_v47 }
 0x11f   :  { %v210_v57 = vor.u32 1.1754944e-38, %v209_v53  ;;  %vm208_vm11 = vcmp.eq.f32.partialorder %v207_v55, 8.507059e+37 }
 0x123   :  { %v265_v48 = vpop.eup %264 }
 0x124   :  { %v199_v50 = vmul.f32 %v265_v48, %v197_v47  ;;  %vm204_vm7 = vweird.f32 %v265_v48 }
 0x125   :  { %vm205_vm10 = vmor %vm203_vm8, %vm204_vm7 }
 0x126   :  { %v200_v51 = vsub.f32 1.0, %v199_v50 }
 0x128   :  { %v201_v54 = vmul.f32 %v265_v48, %v200_v51 }
 0x12a   :  { %v202_v56 = vadd.f32 %v265_v48, %v201_v54 }
 0x12c   :  { %v206_v58 = vsel %vm205_vm10, %v265_v48, %v202_v56 }
 0x12d   :  { %v211_v59 = vsel %vm208_vm11, %v210_v57, %v206_v58 }
 0x12e   :  { %v213_v60 = vsel %vm193_vm9, %v190_v44, %v211_v59 }
 0x12f   :  { %214 = vst [vmem:[#allocation2] sm:$0xf] %v213_v60 }
 0x130   :  { %225 = dma.vmem_to_hbm [thread:$0]  %s221_s17, 64, %s223_s20, [#allocation3]  }
 0x131   :  { %290 = dma.done.wait [#allocation3], 64  }
 0x132   :  { %291 = vsyncadd [#allocation3], 4294967232 }
 0x133   :  { %230 = vsyncpa [#allocation3], 1 }

</bundles_post_ra>
